<compile_context>
chip_gen: v7x
topology: tpu7x:2x2x1
jax: 0.10.0
libtpu: 0.0.40
codegen_flags: <defaults>
</compile_context>

<pallas_src>
import functools

import jax
import jax.numpy as jnp
from jax.experimental import pallas as pl
from jax.experimental.pallas import tpu as pltpu

EPS = 1e-5


def _fused_conv_bn_relu_kernel(x_ref, m1_ref, b1_ref, m2_ref, b2_ref, o_ref, *, H):
    # x_ref : (R, W*Cin)         R = B*H rows of B images stacked, lanes = (w, ci)
    # m1_ref: (3*W*Cin, W*Cout)  im2row-merged conv-1 weights (BN scale folded)
    # b1_ref: (1, W*Cout)        folded conv-1 bias + BN shift, tiled over w
    # m2_ref: (3*W*Cout, W*Cout) same for conv-2
    # b2_ref: (1, W*Cout)
    # o_ref : (R, W*Cout)        lane-dense output slab
    R = x_ref.shape[0]

    # Per-image row masks: row h==0 has no row above it, row h==H-1 none below.
    h_in_img = jax.lax.broadcasted_iota(jnp.int32, (R, 1), 0) % H
    is_first = h_in_img == 0
    is_last = h_in_img == H - 1

    def stage(xs, m_ref, b_ref):
        zero_row = jnp.zeros((1, xs.shape[1]), xs.dtype)
        # prev[r] = xs[r-1]  (zero at each image's first row)  -> kernel row dy=0
        prev = jnp.where(is_first, 0.0,
                         jnp.concatenate([zero_row, xs[:-1, :]], axis=0))
        # nxt[r]  = xs[r+1]  (zero at each image's last row)   -> kernel row dy=2
        nxt = jnp.where(is_last, 0.0,
                        jnp.concatenate([xs[1:, :], zero_row], axis=0))
        # im2row: one lane-dense LHS, a single MXU matmul per stage (K = 3*W*C).
        lhs = jnp.concatenate([prev, xs, nxt], axis=1)
        acc = jnp.dot(lhs, m_ref[...], preferred_element_type=jnp.float32)
        return jnp.maximum(acc + b_ref[...], 0.0)            # folded bias + BN, ReLU

    y1 = stage(x_ref[...], m1_ref, b1_ref)                    # stage 1 (VMEM-resident)
    o_ref[...] = stage(y1, m2_ref, b2_ref).astype(o_ref.dtype)


def _fold_stage(p, W):
    """Fold conv bias + BatchNorm(eval) and build the im2row banded matmul operands.

    Returns:
      band  : (3*W*Cin, W*Cout); row (dy, wi, ci), col (w, co) holds
              scale[co] * w[dy, wi-w+1, ci, co], zero outside |wi-w| <= 1 (the
              conv's zero column-padding is folded in).
      b_tile: (1, W*Cout) folded bias tiled over w to match the (w, co) lanes.
    """
    scale = p["gamma"] / jnp.sqrt(p["var"] + EPS)              # (Cout,)
    bias = (p["b"] - p["mean"]) * scale + p["beta"]            # (Cout,)
    w_hwio = jnp.transpose(p["w"], (2, 3, 1, 0)) * scale       # OIHW -> (dy, dx, ci, co)
    Cin, Cout = w_hwio.shape[2], w_hwio.shape[3]
    # eyes[dx, wi, w] = 1  iff  wi == w + dx - 1   (the 3-tap band per kernel column)
    eyes = jnp.stack([jnp.eye(W, W, k=1 - dx, dtype=w_hwio.dtype) for dx in range(3)])
    # band[dy, wi, ci, w, co]  -- note output order "...wc" so cols flatten as (w, co)
    band = jnp.einsum("xpw,yxic->ypiwc", eyes, w_hwio)         # (3, W, Cin, W, Cout)
    band = band.reshape(3 * W * Cin, W * Cout)                 # K-merged over dy
    b_tile = jnp.tile(bias, W).reshape(1, W * Cout)
    return band, b_tile


def _pick_batch_tile(N, H, max_rows=128):
    """Images per grid step: fill MXU rows (B*H <= max_rows) but keep >= 2 grid
    steps when possible so the 'parallel' axis can shard across v7x's 2 TCs."""
    max_b = max(1, max_rows // H)
    divs = [b for b in range(1, N + 1) if N % b == 0 and b <= max_b]
    pref = [b for b in divs if N // b >= 2]
    return max(pref) if pref else max(divs)


def conv_bn_relu_forward(x_nchw, params1, params2, batch_tile=None):
    """Conv_BN_Relu.forward. Input/output are NCHW like PyTorch; one transpose in,
    one transpose out, everything in between is channels-last and fused."""
    x = jnp.transpose(x_nchw, (0, 2, 3, 1))                    # NCHW -> NHWC
    N, H, W, Cin = x.shape
    Cout = params1["w"].shape[0]

    m1, b1 = _fold_stage(params1, W)                           # (3*W*Cin,  W*Cout)
    m2, b2 = _fold_stage(params2, W)                           # (3*W*Cout, W*Cout)

    B = batch_tile if batch_tile is not None else _pick_batch_tile(N, H)
    assert N % B == 0, "batch tile must divide batch"
    R = B * H

    x_flat = x.reshape(N * H, W * Cin)                         # contiguous, free reshape

    kernel = functools.partial(_fused_conv_bn_relu_kernel, H=H)

    # TODO(synk): mark the grid-invariant weight/bias specs pipeline_mode=pl.Buffered(1)
    # to drop their dead second buffer when scaling W/C (negligible at these sizes).
    out_flat = pl.pallas_call(
        kernel,
        out_shape=jax.ShapeDtypeStruct((N * H, W * Cout), jnp.float32),
        grid=(N // B,),
        in_specs=[
            pl.BlockSpec((R, W * Cin), lambda i: (i, 0)),
            pl.BlockSpec((3 * W * Cin, W * Cout), lambda i: (0, 0)),
            pl.BlockSpec((1, W * Cout), lambda i: (0, 0)),
            pl.BlockSpec((3 * W * Cout, W * Cout), lambda i: (0, 0)),
            pl.BlockSpec((1, W * Cout), lambda i: (0, 0)),
        ],
        out_specs=pl.BlockSpec((R, W * Cout), lambda i: (i, 0)),
        compiler_params=pltpu.CompilerParams(
            dimension_semantics=("parallel",)),
    )(x_flat, m1, b1, m2, b2)

    out = out_flat.reshape(N, H, W, Cout)                      # contiguous, free reshape
    return jnp.transpose(out, (0, 3, 1, 2))                    # NHWC -> NCHW


def init_stage_params(key, cin, cout):
    """Deterministic parameter init matching nn.Conv2d + nn.BatchNorm2d shapes."""
    kw, kb, kg, kbe, km, kv = jax.random.split(key, 6)
    fan_in = cin * 3 * 3
    bound = 1.0 / jnp.sqrt(fan_in)
    return dict(
        w=jax.random.uniform(kw, (cout, cin, 3, 3), jnp.float32, -bound, bound),  # OIHW
        b=jax.random.uniform(kb, (cout,), jnp.float32, -bound, bound),
        gamma=1.0 + 0.1 * jax.random.normal(kg, (cout,), jnp.float32),
        beta=0.1 * jax.random.normal(kbe, (cout,), jnp.float32),
        mean=0.1 * jax.random.normal(km, (cout,), jnp.float32),
        var=jnp.abs(1.0 + 0.1 * jax.random.normal(kv, (cout,), jnp.float32)),
    )


def _reference_stage_nchw(x, p):
    y = jax.lax.conv_general_dilated(
        x, p["w"], window_strides=(1, 1), padding=((1, 1), (1, 1)),
        dimension_numbers=("NCHW", "OIHW", "NCHW"))
    y = y + p["b"][None, :, None, None]
    y = (y - p["mean"][None, :, None, None]) / jnp.sqrt(p["var"][None, :, None, None] + EPS)
    y = y * p["gamma"][None, :, None, None] + p["beta"][None, :, None, None]
    return jnp.maximum(y, 0.0)


if __name__ == "__main__":
    key = jax.random.PRNGKey(0)
    kx, k1, k2 = jax.random.split(key, 3)

    N, CIN, COUT, H, W = 2, 4, 8, 16, 16
    x = jax.random.normal(kx, (N, CIN, H, W), jnp.float32)

    p1 = init_stage_params(k1, CIN, COUT)
    p2 = init_stage_params(k2, COUT, COUT)

    out = jax.jit(conv_bn_relu_forward)(x, p1, p2)
    out = jax.block_until_ready(out)

    ref = _reference_stage_nchw(_reference_stage_nchw(x, p1), p2)
    assert out.shape == (N, COUT, H, W)
    assert jnp.allclose(out, ref, atol=1e-4, rtol=1e-4), "mismatch vs reference"

    print("KERNEL_OK")
</pallas_src>

<mosaic_0001>
module attributes {stable_mosaic.version = 11 : i64} {
  func.func @_fused_conv_bn_relu_kernel(%arg0: i32, %arg1: memref<16x64xf32, #tpu.memory_space<vmem>>, %arg2: memref<192x128xf32, #tpu.memory_space<vmem>>, %arg3: memref<1x128xf32, #tpu.memory_space<vmem>>, %arg4: memref<384x128xf32, #tpu.memory_space<vmem>>, %arg5: memref<1x128xf32, #tpu.memory_space<vmem>>, %arg6: memref<16x128xf32, #tpu.memory_space<vmem>>) attributes {dimension_semantics = [#tpu.dimension_semantics<parallel>], iteration_bounds = array<i64: 2>, scalar_prefetch = 0 : i64, scratch_operands = 0 : i64, tpu.core_type = #tpu.core_type<tc>, window_params = [{transform_indices = @transform_0, window_bounds = array<i64: 16, 64>}, {pipeline_mode = #tpu.pipeline_mode<synchronous>, transform_indices = @transform_1, window_bounds = array<i64: 192, 128>}, {pipeline_mode = #tpu.pipeline_mode<synchronous>, transform_indices = @transform_2, window_bounds = array<i64: 1, 128>}, {pipeline_mode = #tpu.pipeline_mode<synchronous>, transform_indices = @transform_3, window_bounds = array<i64: 384, 128>}, {pipeline_mode = #tpu.pipeline_mode<synchronous>, transform_indices = @transform_4, window_bounds = array<i64: 1, 128>}, {transform_indices = @transform_5, window_bounds = array<i64: 16, 128>}]} {
    %0 = tpu.iota {dimensions = array<i32: 0>} : vector<16x1xi32>
    %c16_i32 = arith.constant 16 : i32
    %c0_i32 = arith.constant 0 : i32
    %1 = arith.cmpi eq, %c16_i32, %c0_i32 : i32
    %c1_i32 = arith.constant 1 : i32
    %2 = arith.select %1, %c1_i32, %c16_i32 : i32
    %3 = vector.broadcast %2 : i32 to vector<16x1xi32>
    %4 = arith.remsi %0, %3 : vector<16x1xi32>
    %c0_i32_0 = arith.constant 0 : i32
    %5 = vector.broadcast %c0_i32_0 : i32 to vector<16x1xi32>
    %6 = arith.cmpi ne, %4, %5 : vector<16x1xi32>
    %c0_i32_1 = arith.constant 0 : i32
    %7 = vector.broadcast %c0_i32_1 : i32 to vector<16x1xi32>
    %8 = arith.cmpi slt, %4, %7 : vector<16x1xi32>
    %c0_i32_2 = arith.constant 0 : i32
    %9 = arith.cmpi slt, %2, %c0_i32_2 : i32
    %10 = vector.broadcast %9 : i1 to vector<16x1xi1>
    %11 = vector.broadcast %10 : vector<16x1xi1> to vector<16x1xi1>
    %12 = arith.xori %8, %11 : vector<16x1xi1>
    %13 = arith.andi %12, %6 : vector<16x1xi1>
    %14 = vector.broadcast %2 : i32 to vector<16x1xi32>
    %15 = arith.addi %4, %14 : vector<16x1xi32>
    %16 = arith.select %13, %15, %4 : vector<16x1xi1>, vector<16x1xi32>
    %c0_i32_3 = arith.constant 0 : i32
    %17 = vector.broadcast %c0_i32_3 : i32 to vector<16x1xi32>
    %18 = arith.cmpi eq, %16, %17 : vector<16x1xi32>
    %c15_i32 = arith.constant 15 : i32
    %19 = vector.broadcast %c15_i32 : i32 to vector<16x1xi32>
    %20 = arith.cmpi eq, %16, %19 : vector<16x1xi32>
    %c0 = arith.constant 0 : index
    %c0_4 = arith.constant 0 : index
    %21 = vector.load %arg1[%c0, %c0_4] : memref<16x64xf32, #tpu.memory_space<vmem>>, vector<16x64xf32>
    %cst = arith.constant 0.000000e+00 : f32
    %22 = vector.broadcast %cst : f32 to vector<1x64xf32>
    %23 = vector.extract_strided_slice %21 {offsets = [0, 0], sizes = [15, 64], strides = [1, 1]} : vector<16x64xf32> to vector<15x64xf32>
    %24 = tpu.concatenate %22, %23 in 0 : vector<1x64xf32>, vector<15x64xf32> -> vector<16x64xf32>
    %cst_5 = arith.constant 0.000000e+00 : f32
    %25 = vector.shape_cast %18 : vector<16x1xi1> to vector<16x1xi1>
    %26 = vector.broadcast %25 : vector<16x1xi1> to vector<16x64xi1>
    %27 = vector.broadcast %cst_5 : f32 to vector<16x64xf32>
    %28 = arith.select %26, %27, %24 : vector<16x64xi1>, vector<16x64xf32>
    %29 = vector.extract_strided_slice %21 {offsets = [1, 0], sizes = [15, 64], strides = [1, 1]} : vector<16x64xf32> to vector<15x64xf32>
    %30 = tpu.concatenate %29, %22 in 0 : vector<15x64xf32>, vector<1x64xf32> -> vector<16x64xf32>
    %cst_6 = arith.constant 0.000000e+00 : f32
    %31 = vector.shape_cast %20 : vector<16x1xi1> to vector<16x1xi1>
    %32 = vector.broadcast %31 : vector<16x1xi1> to vector<16x64xi1>
    %33 = vector.broadcast %cst_6 : f32 to vector<16x64xf32>
    %34 = arith.select %32, %33, %30 : vector<16x64xi1>, vector<16x64xf32>
    %35 = tpu.concatenate %28, %21, %34 in 1 : vector<16x64xf32>, vector<16x64xf32>, vector<16x64xf32> -> vector<16x192xf32>
    %c0_7 = arith.constant 0 : index
    %c0_8 = arith.constant 0 : index
    %36 = vector.load %arg2[%c0_7, %c0_8] : memref<192x128xf32, #tpu.memory_space<vmem>>, vector<192x128xf32>
    %cst_9 = arith.constant dense<0.000000e+00> : vector<16x128xf32>
    %37 = tpu.matmul %35, %36, %cst_9 {dimension_numbers = #tpu.dot_dimension_numbers<[1], [0], [0], [1], [0, 0, 1, 1], [], []>} : vector<16x192xf32>, vector<192x128xf32>, vector<16x128xf32> -> vector<16x128xf32>
    %c0_10 = arith.constant 0 : index
    %c0_11 = arith.constant 0 : index
    %38 = vector.load %arg3[%c0_10, %c0_11] : memref<1x128xf32, #tpu.memory_space<vmem>>, vector<1x128xf32>
    %39 = vector.broadcast %38 : vector<1x128xf32> to vector<16x128xf32>
    %40 = arith.addf %37, %39 : vector<16x128xf32>
    %cst_12 = arith.constant 0.000000e+00 : f32
    %41 = vector.broadcast %cst_12 : f32 to vector<16x128xf32>
    %42 = arith.maximumf %40, %41 : vector<16x128xf32>
    %cst_13 = arith.constant 0.000000e+00 : f32
    %43 = vector.broadcast %cst_13 : f32 to vector<1x128xf32>
    %44 = vector.extract_strided_slice %42 {offsets = [0, 0], sizes = [15, 128], strides = [1, 1]} : vector<16x128xf32> to vector<15x128xf32>
    %45 = tpu.concatenate %43, %44 in 0 : vector<1x128xf32>, vector<15x128xf32> -> vector<16x128xf32>
    %cst_14 = arith.constant 0.000000e+00 : f32
    %46 = vector.shape_cast %18 : vector<16x1xi1> to vector<16x1xi1>
    %47 = vector.broadcast %46 : vector<16x1xi1> to vector<16x128xi1>
    %48 = vector.broadcast %cst_14 : f32 to vector<16x128xf32>
    %49 = arith.select %47, %48, %45 : vector<16x128xi1>, vector<16x128xf32>
    %50 = vector.extract_strided_slice %42 {offsets = [1, 0], sizes = [15, 128], strides = [1, 1]} : vector<16x128xf32> to vector<15x128xf32>
    %51 = tpu.concatenate %50, %43 in 0 : vector<15x128xf32>, vector<1x128xf32> -> vector<16x128xf32>
    %cst_15 = arith.constant 0.000000e+00 : f32
    %52 = vector.shape_cast %20 : vector<16x1xi1> to vector<16x1xi1>
    %53 = vector.broadcast %52 : vector<16x1xi1> to vector<16x128xi1>
    %54 = vector.broadcast %cst_15 : f32 to vector<16x128xf32>
    %55 = arith.select %53, %54, %51 : vector<16x128xi1>, vector<16x128xf32>
    %56 = tpu.concatenate %49, %42, %55 in 1 : vector<16x128xf32>, vector<16x128xf32>, vector<16x128xf32> -> vector<16x384xf32>
    %c0_16 = arith.constant 0 : index
    %c0_17 = arith.constant 0 : index
    %57 = vector.load %arg4[%c0_16, %c0_17] : memref<384x128xf32, #tpu.memory_space<vmem>>, vector<384x128xf32>
    %cst_18 = arith.constant dense<0.000000e+00> : vector<16x128xf32>
    %58 = tpu.matmul %56, %57, %cst_18 {dimension_numbers = #tpu.dot_dimension_numbers<[1], [0], [0], [1], [0, 0, 1, 1], [], []>} : vector<16x384xf32>, vector<384x128xf32>, vector<16x128xf32> -> vector<16x128xf32>
    %c0_19 = arith.constant 0 : index
    %c0_20 = arith.constant 0 : index
    %59 = vector.load %arg5[%c0_19, %c0_20] : memref<1x128xf32, #tpu.memory_space<vmem>>, vector<1x128xf32>
    %60 = vector.broadcast %59 : vector<1x128xf32> to vector<16x128xf32>
    %61 = arith.addf %58, %60 : vector<16x128xf32>
    %cst_21 = arith.constant 0.000000e+00 : f32
    %62 = vector.broadcast %cst_21 : f32 to vector<16x128xf32>
    %63 = arith.maximumf %61, %62 : vector<16x128xf32>
    %c0_22 = arith.constant 0 : index
    %c0_23 = arith.constant 0 : index
    %64 = vector.load %arg6[%c0_22, %c0_23] : memref<16x128xf32, #tpu.memory_space<vmem>>, vector<16x128xf32>
    tpu.vector_store %arg6[%c0_22, %c0_23], %63 {strides = array<i32>} : memref<16x128xf32, #tpu.memory_space<vmem>>, vector<16x128xf32>,
    return
  }
  func.func @transform_0(%arg0: i32) -> (i32, i32) {
    %c0_i32 = arith.constant 0 : i32
    %c0_i32_0 = arith.constant 0 : i32
    return %arg0, %c0_i32 : i32, i32
  }
  func.func @transform_1(%arg0: i32) -> (i32, i32) {
    %c0_i32 = arith.constant 0 : i32
    %c0_i32_0 = arith.constant 0 : i32
    %c0_i32_1 = arith.constant 0 : i32
    return %c0_i32, %c0_i32_0 : i32, i32
  }
  func.func @transform_2(%arg0: i32) -> (i32, i32) {
    %c0_i32 = arith.constant 0 : i32
    %c0_i32_0 = arith.constant 0 : i32
    %c0_i32_1 = arith.constant 0 : i32
    return %c0_i32, %c0_i32_0 : i32, i32
  }
  func.func @transform_3(%arg0: i32) -> (i32, i32) {
    %c0_i32 = arith.constant 0 : i32
    %c0_i32_0 = arith.constant 0 : i32
    %c0_i32_1 = arith.constant 0 : i32
    return %c0_i32, %c0_i32_0 : i32, i32
  }
  func.func @transform_4(%arg0: i32) -> (i32, i32) {
    %c0_i32 = arith.constant 0 : i32
    %c0_i32_0 = arith.constant 0 : i32
    %c0_i32_1 = arith.constant 0 : i32
    return %c0_i32, %c0_i32_0 : i32, i32
  }
  func.func @transform_5(%arg0: i32) -> (i32, i32) {
    %c0_i32 = arith.constant 0 : i32
    %c0_i32_0 = arith.constant 0 : i32
    return %arg0, %c0_i32 : i32, i32
  }
}

</mosaic_0001>

<bundles_post_ra>
// kernel: tile.13
= control target key start
LH: loop header
LB: loop body
LE: loop exit
PB: predicated region body
PF: predicated region fallthrough
CT: control target
= control target key end

     0   :  { %s28_s0 = inlined_call_operand.vmem [shape: f32[8], index: 0, kind: input, shape index: {}]   ;;  %s29_s1 = inlined_call_operand.vmem [shape: f32[16,8], index: 1, kind: output, shape index: {}]  }
   0x1   :  { %v4_v0 = vld [vmem:[%s28_s0] ss:$0 sm:$0xff] }
   0x2   :  { %5 = vst [vmem:[%s29_s1] sm:$0xff] %v4_v0  ;;  %8 = vst [vmem:[%s29_s1 + $0x8] sm:$0xff] %v4_v0 }

// kernel: tile.14
= control target key start
LH: loop header
LB: loop body
LE: loop exit
PB: predicated region body
PF: predicated region fallthrough
CT: control target
= control target key end

     0   :  { %s131_s10 = smov 120   ;;  %s132_s11 = smov 104   ;;  %vm3_vm0 = vcmask 64512   ;;  %vm9_vm1 = vcmask 1048512   ;;  %vm15_vm2 = vcmask 982912   ;;  %vm21_vm3 = vcmask 917312   ;;  %s207_s0 = inlined_call_operand.vmem [shape: f32[16,8], index: 0, kind: input, shape index: {}]   ;;  %s208_s1 = inlined_call_operand.vmem [shape: f32[1,128], index: 1, kind: output, shape index: {}]  }
   0x1   :  { %v101_v0 = vld [vmem:[%s207_s0 + $0xf] sm:$0x1]   ;;  %v103_v1 = vld [vmem:[%s207_s0 + $0xd] sm:$0x1]   ;;  %v102_v2 = vld [vmem:[%s207_s0 + $0xe] sm:$0x1]  }
   0x2   :  { %7 = vrot.lane.b32.xlu0 %v101_v0, %s131_s10  ;;  %19 = vrot.lane.b32.xlu1 %v103_v1, %s132_s11  ;;  %v104_v3 = vld [vmem:[%s207_s0 + $0xc] sm:$0x1]   ;;  %s133_s16 = smov 112   ;;  %s134_s17 = smov 96   ;;  %v105_v4 = vld [vmem:[%s207_s0 + $0xb] sm:$0x1]  }
   0x3   :  { %v106_v5 = vld [vmem:[%s207_s0 + $0xa] sm:$0x1]   ;;  %v2_v6 = vld [vmem:[%s207_s0] sm:$0x1]   ;;  %s135_s24 = smov 88   ;;  %s136_s25 = smov 80  }
   0x4   :  { %4 = vst.msk [vmem:[#allocation0] sm:$0x1] %vm3_vm0, %v2_v6   ;;  %v107_v7 = vld [vmem:[%s207_s0 + $0x9] sm:$0x1]   ;;  %v108_v8 = vld [vmem:[%s207_s0 + $0x8] sm:$0x1]  }
   0x5   :  { %s137_s30 = smov 72   ;;  %s138_s2 = smov 64   ;;  %v109_v9 = vld [vmem:[%s207_s0 + $0x7] sm:$0x1]   ;;  %v110_v10 = vld [vmem:[%s207_s0 + $0x6] sm:$0x1]  }
   0x6   :  { %13 = vrot.lane.b32.xlu0 %v102_v2, %s133_s16  ;;  %25 = vrot.lane.b32.xlu1 %v104_v3, %s134_s17  ;;  %s139_s7 = smov 56   ;;  %s140_s8 = smov 48   ;;  %v111_v11 = vld [vmem:[%s207_s0 + $0x5] sm:$0x1]   ;;  %v112_v12 = vld [vmem:[%s207_s0 + $0x4] sm:$0x1]  }
   0x7   :  { %s141_s13 = smov 40   ;;  %s142_s14 = smov 32   ;;  %v113_v13 = vld [vmem:[%s207_s0 + $0x3] sm:$0x1]   ;;  %v114_v14 = vld [vmem:[%s207_s0 + $0x2] sm:$0x1]  }
   0x8   :  { %s143_s19 = smov 24   ;;  %s144_s20 = smov 16   ;;  %v115_v15 = vld [vmem:[%s207_s0 + $0x1] sm:$0x1]   ;;  %vm27_vm4 = vcmask 851712   ;;  %vm33_vm5 = vcmask 786112  }
   0x9   :  { %s145_s0 = smov 8   ;;  %vm39_vm6 = vcmask 720512   ;;  %vm45_vm7 = vcmask 654912   ;;  %vm51_vm8 = vcmask 589312   ;;  %vm57_vm9 = vcmask 523712  }
   0xa   :  { %31 = vrot.lane.b32.xlu0 %v105_v4, %s135_s24  ;;  %37 = vrot.lane.b32.xlu1 %v106_v5, %s136_s25  ;;  %vm63_vm10 = vcmask 458112   ;;  %vm69_vm11 = vcmask 392512   ;;  %vm75_vm12 = vcmask 326912   ;;  %vm81_vm13 = vcmask 261312  }
   0xb   :  { %vm87_vm14 = vcmask 195712   ;;  %vm93_vm15 = vcmask 130112  }
   0xe   :  { %43 = vrot.lane.b32.xlu0 %v107_v7, %s137_s30  ;;  %49 = vrot.lane.b32.xlu1 %v108_v8, %s138_s2 }
  0x12   :  { %55 = vrot.lane.b32.xlu0 %v109_v9, %s139_s7  ;;  %61 = vrot.lane.b32.xlu1 %v110_v10, %s140_s8 }
  0x16   :  { %67 = vrot.lane.b32.xlu0 %v111_v11, %s141_s13  ;;  %73 = vrot.lane.b32.xlu1 %v112_v12, %s142_s14 }
  0x1a   :  { %79 = vrot.lane.b32.xlu0 %v113_v13, %s143_s19  ;;  %85 = vrot.lane.b32.xlu1 %v114_v14, %s144_s20 }
  0x1e   :  { %91 = vrot.lane.b32.xlu0 %v115_v15, %s145_s0 }
  0x74   :  { %v8_v16 = vpop.permute.xlu0 %7   ;;  %v20_v17 = vpop.permute.xlu1 %19  }
  0x75   :  { %10 = vst.msk [vmem:[#allocation0] sm:$0x1] %vm9_vm1, %v8_v16  }
  0x78   :  { %v14_v18 = vpop.permute.xlu0 %13   ;;  %v26_v19 = vpop.permute.xlu1 %25  }
  0x79   :  { %16 = vst.msk [vmem:[#allocation0] sm:$0x1] %vm15_vm2, %v14_v18  }
  0x7a   :  { %22 = vst.msk [vmem:[#allocation0] sm:$0x1] %vm21_vm3, %v20_v17  }
  0x7b   :  { %28 = vst.msk [vmem:[#allocation0] sm:$0x1] %vm27_vm4, %v26_v19  }
  0x7c   :  { %v32_v20 = vpop.permute.xlu0 %31   ;;  %v38_v21 = vpop.permute.xlu1 %37  }
  0x7d   :  { %34 = vst.msk [vmem:[#allocation0] sm:$0x1] %vm33_vm5, %v32_v20  }
  0x7e   :  { %40 = vst.msk [vmem:[#allocation0] sm:$0x1] %vm39_vm6, %v38_v21  }
  0x80   :  { %v44_v22 = vpop.permute.xlu0 %43   ;;  %v50_v23 = vpop.permute.xlu1 %49  }
  0x81   :  { %46 = vst.msk [vmem:[#allocation0] sm:$0x1] %vm45_vm7, %v44_v22  }
  0x82   :  { %52 = vst.msk [vmem:[#allocation0] sm:$0x1] %vm51_vm8, %v50_v23  }
  0x84   :  { %v56_v24 = vpop.permute.xlu0 %55   ;;  %v62_v25 = vpop.permute.xlu1 %61  }
  0x85   :  { %58 = vst.msk [vmem:[#allocation0] sm:$0x1] %vm57_vm9, %v56_v24  }
  0x86   :  { %64 = vst.msk [vmem:[#allocation0] sm:$0x1] %vm63_vm10, %v62_v25  }
  0x88   :  { %v68_v26 = vpop.permute.xlu0 %67   ;;  %v74_v27 = vpop.permute.xlu1 %73  }
  0x89   :  { %70 = vst.msk [vmem:[#allocation0] sm:$0x1] %vm69_vm11, %v68_v26  }
  0x8a   :  { %76 = vst.msk [vmem:[#allocation0] sm:$0x1] %vm75_vm12, %v74_v27  }
  0x8c   :  { %v80_v28 = vpop.permute.xlu0 %79   ;;  %v86_v29 = vpop.permute.xlu1 %85  }
  0x8d   :  { %82 = vst.msk [vmem:[#allocation0] sm:$0x1] %vm81_vm13, %v80_v28  }
  0x8e   :  { %88 = vst.msk [vmem:[#allocation0] sm:$0x1] %vm87_vm14, %v86_v29  }
  0x90   :  { %v92_v30 = vpop.permute.xlu0 %91  }
  0x91   :  { %94 = vst.msk [vmem:[#allocation0] sm:$0x1] %vm93_vm15, %v92_v30  }
  0x98   :  { %v98_v31 = vld [vmem:[#allocation0] sm:$0x1] }
  0x99   :  { %100 = vst [vmem:[%s208_s1] sm:$0x1] %v98_v31 }

// kernel: conv_bn_relu_forward.1
= control target key start
LH: loop header
LB: loop body
LE: loop exit
PB: predicated region body
PF: predicated region fallthrough
CT: control target
= control target key end

     0   :  { %s955_s18 = smov 0   ;;  %s1262_s0 = inlined_call_operand.vmem [shape: f32[32,64], index: 0, kind: input, shape index: {}]   ;;  %s1263_s1 = inlined_call_operand.vmem [shape: f32[192,128], index: 1, kind: input, shape index: {}]   ;;  %s1264_s2 = inlined_call_operand.vmem [shape: f32[1,128], index: 2, kind: input, shape index: {}]   ;;  %s1265_s3 = inlined_call_operand.vmem [shape: f32[384,128], index: 3, kind: input, shape index: {}]   ;;  %s1266_s4 = inlined_call_operand.vmem [shape: f32[1,128], index: 4, kind: input, shape index: {}]   ;;  %s1267_s5 = inlined_call_operand.vmem [shape: f32[32,128], index: 5, kind: output, shape index: {}]  }
   0x1 LB: > { %s695_s19 = sadd.s32 4294967295, %s921_s18   ;;  %p699_p0 = scmp.ge.s32.totalorder %s921_s18, 1  ;;  %s921_s18 = sphi %s955_s18, %s15_s18  }
   0x2   : > { %p188_p1 = scmp.lt.s32.totalorder %s921_s18, 3 }
   0x4   : > { %p189_p2 = pnand %p699_p0, %p188_p1 }
   0x5   : > { %s700_s20 = sshll.u32 (!%p189_p2), %s695_s19, 1  ;;  %v298_v0 = vld [vmem:[%s1263_s1] sm:$0xff] (!%p189_p2)  ;;  %v299_v1 = vld [vmem:[%s1263_s1 + $0x8] sm:$0xff] (!%p189_p2)  ;;  %v300_v2 = vld [vmem:[%s1263_s1 + $0x10] sm:$0xff] (!%p189_p2)  ;;  %v923_v3 = vmov (!%p189_p2), 0.0|0.0   ;;  %vm276_vm0 = vcmask (!%p189_p2), 1046528  }
   0x6   : > { %192 = sbr.rel (%p189_p2) target bundleno = 602 (0x25a), region = 40  ;;  %p217_p3 = scmp.lt.s32.totalorder (!%p189_p2), %s700_s20, 3  ;;  %805 = vmatprep.subr.bf16.mxu0 (!%p189_p2), %v923_v3  ;;  %v806_v4 = vpack.c.bf16 (!%p189_p2), %v299_v1, %v298_v0  ;;  %v301_v5 = vld [vmem:[%s1263_s1 + $0x18] sm:$0xff] (!%p189_p2)  ;;  %v302_v7 = vld [vmem:[%s1263_s1 + $0x20] sm:$0xff] (!%p189_p2)  ;;  %v303_v8 = vld [vmem:[%s1263_s1 + $0x28] sm:$0xff] (!%p189_p2)  ;;  %vm295_vm1 = vcmask (!%p189_p2), 523264  }
   0x7   : > { %v809_v6 = vpack.c.bf16 (!%p189_p2), %v301_v5, %v300_v2  ;;  %v812_v11 = vpack.c.bf16 (!%p189_p2), %v303_v8, %v302_v7  ;;  %s924_s12 = smov (!%p189_p2), 64   ;;  %v304_v16 = vld [vmem:[%s1263_s1 + $0x30] sm:$0xff] (!%p189_p2)  ;;  %v305_v17 = vld [vmem:[%s1263_s1 + $0x38] sm:$0xff] (!%p189_p2)  ;;  %vm263_vm2 = vcmask (!%p189_p2), 1040384   ;;  %v446_v18 = vld [vmem:[%s1265_s3 + $0x80] sm:$0xff] (!%p189_p2) }
   0x8   : > { %807 = vmatpush1.bf16.msra.mxu0 (!%p189_p2), %v806_v4  ;;  %v447_v19 = vld [vmem:[%s1265_s3 + $0x88] sm:$0xff] (!%p189_p2)  ;;  %v430_v20 = vld [vmem:[%s1265_s3] sm:$0xff] (!%p189_p2)  ;;  %v448_v25 = vld [vmem:[%s1265_s3 + $0x90] sm:$0xff] (!%p189_p2)  ;;  %v815_v26 = vpack.c.bf16 (!%p189_p2), %v305_v17, %v304_v16 }
   0x9   : > { %808 = vmatprep.subr.bf16.mxu0 (!%p189_p2), %v923_v3  ;;  %v306_v21 = vld [vmem:[%s1263_s1 + $0x40] sm:$0xff] (!%p189_p2)  ;;  %v431_v24 = vld [vmem:[%s1265_s3 + $0x8] sm:$0xff] (!%p189_p2)  ;;  %v841_v27 = vpack.c.bf16 (!%p189_p2), %v447_v19, %v446_v18  ;;  %v449_v29 = vld [vmem:[%s1265_s3 + $0x98] sm:$0xff] (!%p189_p2) }
   0xa   : > { %v843_v28 = vpack.c.bf16 (!%p189_p2), %v431_v24, %v430_v20  ;;  %v432_v30 = vld [vmem:[%s1265_s3 + $0x10] sm:$0xff] (!%p189_p2)  ;;  %v433_v31 = vld [vmem:[%s1265_s3 + $0x18] sm:$0xff] (!%p189_p2)  ;;  %v307_v32 = vld [vmem:[%s1263_s1 + $0x48] sm:$0xff] (!%p189_p2)  ;;  %v845_v33 = vpack.c.bf16 (!%p189_p2), %v449_v29, %v448_v25 }
   0xb   : > { %v450_v34 = vld [vmem:[%s1265_s3 + $0xa0] sm:$0xff] (!%p189_p2)  ;;  %v451_v35 = vld [vmem:[%s1265_s3 + $0xa8] sm:$0xff] (!%p189_p2)  ;;  %842 = vmatprep.subr.bf16.mxu1 (!%p189_p2), %v841_v27  ;;  %v847_v36 = vpack.c.bf16 (!%p189_p2), %v433_v31, %v432_v30  ;;  %v818_v37 = vpack.c.bf16 (!%p189_p2), %v307_v32, %v306_v21  ;;  %v308_v38 = vld [vmem:[%s1263_s1 + $0x50] sm:$0xff] (!%p189_p2) }
   0xc   : > { %810 = vmatpush1.bf16.msra.mxu0 (!%p189_p2), %v809_v6  ;;  %844 = vmatpush3.bf16.msra.mxu1 (!%p189_p2), %v843_v28  ;;  %v849_v39 = vpack.c.bf16 (!%p189_p2), %v451_v35, %v450_v34  ;;  %v434_v40 = vld [vmem:[%s1265_s3 + $0x20] sm:$0xff] (!%p189_p2)  ;;  %v435_v41 = vld [vmem:[%s1265_s3 + $0x28] sm:$0xff] (!%p189_p2)  ;;  %v309_v42 = vld [vmem:[%s1263_s1 + $0x58] sm:$0xff] (!%p189_p2) }
   0xd   : > { %s1273_s20 = smov (!%p217_p3, %s700_s20), 3  ;;  %811 = vmatprep.subr.bf16.mxu0 %v923_v3  ;;  %846 = vmatprep.subr.bf16.mxu1 %v845_v33  ;;  %v452_v43 = vld [vmem:[%s1265_s3 + $0xb0] sm:$0xff]  ;;  %v453_v44 = vld [vmem:[%s1265_s3 + $0xb8] sm:$0xff]  ;;  %v851_v45 = vpack.c.bf16 %v435_v41, %v434_v40  ;;  %v821_v46 = vpack.c.bf16 %v309_v42, %v308_v38  ;;  %v310_v47 = vld [vmem:[%s1263_s1 + $0x60] sm:$0xff] }
   0xe   : > { %s701_s8 = sshll.u32 %s1273_s20, 3  ;;  %v853_v48 = vpack.c.bf16 %v453_v44, %v452_v43  ;;  %v436_v49 = vld [vmem:[%s1265_s3 + $0x30] sm:$0xff]  ;;  %v437_v50 = vld [vmem:[%s1265_s3 + $0x38] sm:$0xff]  ;;  %v311_v51 = vld [vmem:[%s1263_s1 + $0x68] sm:$0xff] }
   0xf   : > { %s220_s11 = scalar_lea.vmem %s1262_s0, %s701_s8  ;;  %v454_v52 = vld [vmem:[%s1265_s3 + $0xc0] sm:$0xff]  ;;  %v455_v53 = vld [vmem:[%s1265_s3 + $0xc8] sm:$0xff]  ;;  %v855_v54 = vpack.c.bf16 %v437_v50, %v436_v49  ;;  %v824_v55 = vpack.c.bf16 %v311_v51, %v310_v47  ;;  %v312_v56 = vld [vmem:[%s1263_s1 + $0x70] sm:$0xff] }
  0x10   : > { %v991_v9 = vld [vmem:[%s220_s11] sm:$0xff]  ;;  %v993_v10 = vld [vmem:[%s220_s11 + $0x8] sm:$0xff]  ;;  %813 = vmatpush1.bf16.msra.mxu0 %v812_v11  ;;  %848 = vmatpush3.bf16.msra.mxu1 %v847_v36  ;;  %v857_v57 = vpack.c.bf16 %v455_v53, %v454_v52  ;;  %v313_v60 = vld [vmem:[%s1263_s1 + $0x78] sm:$0xff] }
  0x11   : > { %289 = vrot.lane.b32.xlu0 %v991_v9, %s924_s12  ;;  %v264_v12 = vrot.slane %v991_v9, 7  ;;  %v277_v13 = vrot.slane %v991_v9, 1  ;;  %v265_v14 = vrot.slane %v993_v10, 7  ;;  %v278_v15 = vrot.slane %v993_v10, 1  ;;  %814 = vmatprep.subr.bf16.mxu0 %v923_v3  ;;  %v438_v58 = vld [vmem:[%s1265_s3 + $0x40] sm:$0xff]  ;;  %v439_v59 = vld [vmem:[%s1265_s3 + $0x48] sm:$0xff] }
  0x12   : > { %850 = vmatprep.subr.bf16.mxu1 %v849_v39  ;;  %v456_v61 = vld [vmem:[%s1265_s3 + $0xd0] sm:$0xff]  ;;  %v457_v62 = vld [vmem:[%s1265_s3 + $0xd8] sm:$0xff]  ;;  %v859_v63 = vpack.c.bf16 %v439_v59, %v438_v58  ;;  %v827_v0 = vpack.c.bf16 %v313_v60, %v312_v56  ;;  %v314_v1 = vld [vmem:[%s1263_s1 + $0x80] sm:$0xff] }
  0x13   : > { %v279_v22 = vsel %vm276_vm0, %v277_v13, %v278_v15  ;;  %v1025_v23 = vsel %vm263_vm2, %v264_v12, %v265_v14  ;;  %v861_v2 = vpack.c.bf16 %v457_v62, %v456_v61  ;;  %v440_v4 = vld [vmem:[%s1265_s3 + $0x50] sm:$0xff]  ;;  %v441_v5 = vld [vmem:[%s1265_s3 + $0x58] sm:$0xff]  ;;  %v315_v6 = vld [vmem:[%s1263_s1 + $0x88] sm:$0xff]  ;;  %v269_v32 = vsel %vm263_vm2, 0.0, %v264_v12 }
  0x14   : > { %705 = vmatprep.mubr.msk.f32.mxu0 %vm295_vm1, %v279_v22  ;;  %816 = vmatpush1.bf16.msra.mxu0 %v815_v26  ;;  %v458_v7 = vld [vmem:[%s1265_s3 + $0xe0] sm:$0xff]  ;;  %v459_v8 = vld [vmem:[%s1265_s3 + $0xe8] sm:$0xff]  ;;  %v863_v11 = vpack.c.bf16 %v441_v5, %v440_v4  ;;  %v830_v13 = vpack.c.bf16 %v315_v6, %v314_v1  ;;  %v316_v16 = vld [vmem:[%s1263_s1 + $0x90] sm:$0xff]  ;;  %v228_v26 = vlaneseq }
  0x15   : > { %291 = vrot.lane.b32.xlu0 %v993_v10, %s924_s12  ;;  %817 = vmatprep.subr.bf16.mxu0 %v923_v3  ;;  %v865_v14 = vpack.c.bf16 %v459_v8, %v458_v7  ;;  %v317_v17 = vld [vmem:[%s1263_s1 + $0x98] sm:$0xff]  ;;  %v318_v19 = vld [vmem:[%s1263_s1 + $0xa0] sm:$0xff]  ;;  %v319_v20 = vld [vmem:[%s1263_s1 + $0xa8] sm:$0xff]  ;;  %s226_s12 = scalar_lea.vmem %s1267_s5, %s701_s8 }
  0x16   : > { %852 = vmatpush3.bf16.msra.mxu1 %v851_v45  ;;  %v833_v18 = vpack.c.bf16 %v317_v17, %v316_v16  ;;  %v836_v21 = vpack.c.bf16 %v319_v20, %v318_v19  ;;  %v320_v22 = vld [vmem:[%s1263_s1 + $0xb0] sm:$0xff]  ;;  %v321_v24 = vld [vmem:[%s1263_s1 + $0xb8] sm:$0xff]  ;;  %v229_v27 = vshrl.u32 %v228_v26, 7  ;;  %v442_v10 = vld [vmem:[%s1265_s3 + $0x60] sm:$0xff] }
  0x17   : > { %854 = vmatprep.subr.bf16.mxu1 %v853_v48  ;;  %v839_v25 = vpack.c.bf16 %v321_v24, %v320_v22  ;;  %v460_v39 = vld [vmem:[%s1265_s3 + $0xf0] sm:$0xff]  ;;  %v461_v40 = vld [vmem:[%s1265_s3 + $0xf8] sm:$0xff]  ;;  %v462_v44 = vld [vmem:[%s1265_s3 + $0x100] sm:$0xff] }
  0x18   : > { %819 = vmatpush1.bf16.msra.mxu0 %v818_v37  ;;  %v230_v28 = vadd.s32 8, %v229_v27  ;;  %v235_v29 = vand.u32 15, %v229_v27  ;;  %v444_v41 = vld [vmem:[%s1265_s3 + $0x70] sm:$0xff]  ;;  %v445_v42 = vld [vmem:[%s1265_s3 + $0x78] sm:$0xff]  ;;  %v463_v45 = vld [vmem:[%s1265_s3 + $0x108] sm:$0xff] }
  0x19   : > { %820 = vmatprep.subr.bf16.mxu0 %v923_v3  ;;  %v871_v43 = vpack.c.bf16 %v445_v42, %v444_v41  ;;  %v704_v47 = vld [vmem:[%s1264_s2] ss:$0 sm:$0xff]  ;;  %v464_v52 = vld [vmem:[%s1265_s3 + $0x110] sm:$0xff]  ;;  %v465_v53 = vld [vmem:[%s1265_s3 + $0x118] sm:$0xff] }
  0x1a   : > { %856 = vmatpush3.bf16.msra.mxu1 %v855_v54  ;;  %v242_v30 = vand.u32 15, %v230_v28  ;;  %vm1152_vm3 = vcmp.eq.s32.totalorder %v235_v29, 0  ;;  %v877_v58 = vpack.c.bf16 %v465_v53, %v464_v52  ;;  %v466_v61 = vld [vmem:[%s1265_s3 + $0x120] sm:$0xff]  ;;  %v467_v62 = vld [vmem:[%s1265_s3 + $0x128] sm:$0xff]  ;;  %v468_v6 = vld [vmem:[%s1265_s3 + $0x130] sm:$0xff] }
  0x1b   : > { %858 = vmatprep.subr.bf16.mxu1 %v857_v57  ;;  %v274_v34 = vsel %vm1152_vm3, 0.0, %v269_v32  ;;  %vm708_vm5 = vmneg %vm1152_vm3  ;;  %v469_v7 = vld [vmem:[%s1265_s3 + $0x138] sm:$0xff]  ;;  %v472_v16 = vld [vmem:[%s1265_s3 + $0x150] sm:$0xff] }
  0x1c   : > { %822 = vmatpush1.bf16.msra.mxu0 %v821_v46  ;;  %vm1159_vm4 = vcmp.eq.s32.totalorder %v242_v30, 15  ;;  %v873_v46 = vpack.c.bf16 %v463_v45, %v462_v44  ;;  %v885_v8 = vpack.c.bf16 %v469_v7, %v468_v6  ;;  %v473_v17 = vld [vmem:[%s1265_s3 + $0x158] sm:$0xff]  ;;  %v474_v19 = vld [vmem:[%s1265_s3 + $0x160] sm:$0xff]  ;;  %v475_v20 = vld [vmem:[%s1265_s3 + $0x168] sm:$0xff] }
  0x1d   : > { %823 = vmatprep.subr.bf16.mxu0 %v923_v3  ;;  %v476_v22 = vld [vmem:[%s1265_s3 + $0x170] sm:$0xff]  ;;  %v477_v24 = vld [vmem:[%s1265_s3 + $0x178] sm:$0xff]  ;;  %vm710_vm6 = vmneg %vm1159_vm4 }
  0x1e   : > { %860 = vmatpush3.bf16.msra.mxu1 %v859_v63 }
  0x1f   : > { %862 = vmatprep.subr.bf16.mxu1 %v861_v2  ;;  %v881_v2 = vpack.c.bf16 %v467_v62, %v466_v61 }
  0x20   : > { %825 = vmatpush1.bf16.msra.mxu0 %v824_v55 }
  0x21   : > { %826 = vmatprep.subr.bf16.mxu0 %v923_v3 }
  0x22   : > { %864 = vmatpush3.bf16.msra.mxu1 %v863_v11  ;;  %v470_v11 = vld [vmem:[%s1265_s3 + $0x140] sm:$0xff] }
  0x23   : > { %866 = vmatprep.subr.bf16.mxu1 %v865_v14 }
  0x24   : > { %828 = vmatpush1.bf16.msra.mxu0 %v827_v0 }
  0x25   : > { %829 = vmatprep.subr.bf16.mxu0 %v923_v3 }
  0x28   : > { %831 = vmatpush1.bf16.msra.mxu0 %v830_v13  ;;  %v471_v13 = vld [vmem:[%s1265_s3 + $0x148] sm:$0xff] }
  0x29   : > { %832 = vmatprep.subr.bf16.mxu0 %v923_v3  ;;  %v889_v14 = vpack.c.bf16 %v471_v13, %v470_v11 }
  0x2c   : > { %834 = vmatpush1.bf16.msra.mxu0 %v833_v18  ;;  %v893_v18 = vpack.c.bf16 %v473_v17, %v472_v16 }
  0x2d   : > { %835 = vmatprep.subr.bf16.mxu0 %v923_v3 }
  0x30   : > { %837 = vmatpush1.bf16.msra.mxu0 %v836_v21  ;;  %v897_v21 = vpack.c.bf16 %v475_v20, %v474_v19 }
  0x31   : > { %838 = vmatprep.subr.bf16.mxu0 %v923_v3  ;;  %v282_v3 = vsel %vm276_vm0, %v278_v15, 0.0  ;;  %v443_v15 = vld [vmem:[%s1265_s3 + $0x68] sm:$0xff] }
  0x32   : > { %v288_v36 = vsel %vm1159_vm4, 0.0, %v282_v3  ;;  %v867_v38 = vpack.c.bf16 %v443_v15, %v442_v10  ;;  %v707_v3 = vld [vmem:[%s1266_s4] ss:$0 sm:$0xff] }
  0x34   : > { %840 = vmatpush1.bf16.msra.mxu0 %v839_v25  ;;  %868 = vmatpush3.bf16.msra.mxu1 %v867_v38  ;;  %v901_v25 = vpack.c.bf16 %v477_v24, %v476_v22 }
  0x83   : > { %v290_v35 = vpop.permute.xlu0 %289 }
  0x84   : > { %v296_v37 = vsel %vm295_vm1, %v274_v34, %v290_v35 }
  0x85   : > { %400 = vmatmul.mubr.f32.vlgmr.msra.gmra.mrb[0].mxu0 %v296_v37 }
  0x86   : > { %706 = vmatprep.mubr.msk.f32.mxu0 %vm295_vm1, %v288_v36 }
  0x87   : > { %v292_v9 = vpop.permute.xlu0 %291 }
  0x88   : > { %v297_v12 = vsel %vm295_vm1, %v1025_v23, %v292_v9  ;;  %v869_v23 = vpack.c.bf16 %v461_v40, %v460_v39 }
  0x89   : > { %405 = vmatmul.mubr.f32.gmra.mrb[2].mxu0 %v297_v12 }
  0x8a   : > { %870 = vmatprep.subr.bf16.mxu1 %v869_v23 }
  0x8b   : > { %872 = vmatpush3.bf16.msra.mxu1 %v871_v43 }
  0x8c   : > { %874 = vmatprep.subr.bf16.mxu1 %v873_v46 }
 0x158   : > { %v401_v48 = vpop.f32.mrb[0].mxu0 }
 0x159   : > { %v402_v49 = vadd.f32 %v704_v47, %v401_v48  ;;  %v403_v50 = vpop.f32.mrb[1].mxu0 }
 0x15b   : > { %v410_v51 = vmax.f32 %v402_v49, 0.0 }
 0x15c   : > { %v406_v54 = vpop.f32.mrb[2].mxu0 }
 0x15d   : > { %v407_v55 = vadd.f32 %v704_v47, %v406_v54  ;;  %549 = vmatprep.mubr.f32.mxu1 %v410_v51  ;;  %v414_v56 = vrot.slane %v410_v51, 7  ;;  %v408_v57 = vpop.f32.mrb[3].mxu0  ;;  %v422_v63 = vrot.slane %v410_v51, 1 }
 0x15f   : > { %v411_v59 = vmax.f32 %v407_v55, 0.0  ;;  %v419_v60 = vsel %vm263_vm2, 0.0, %v414_v56 }
 0x160   : > { %709 = vmatmul.mubr.msk.f32.vlgmr.msra.gmra.mrb[0].mxu1 %vm708_vm5, %v419_v60 }
 0x161   : > { %v415_v0 = vrot.slane %v411_v59, 7  ;;  %v423_v1 = vrot.slane %v411_v59, 1  ;;  %876 = vmatpush3.bf16.msra.mxu1 %v873_v46  ;;  %554 = vmatprep.mubr.f32.mxu1 %v411_v59 }
 0x162   : > { %878 = vmatprep.subr.bf16.mxu1 %v877_v58 }
 0x163   : > { %v416_v4 = vsel %vm263_vm2, %v414_v56, %v415_v0  ;;  %v424_v5 = vsel %vm276_vm0, %v422_v63, %v423_v1  ;;  %v427_v26 = vsel %vm276_vm0, %v423_v1, 0.0 }
 0x164   : > { %555 = vmatmul.mubr.f32.gmra.mrb[2].mxu1 %v416_v4 }
 0x165   : > { %880 = vmatpush3.bf16.msra.mxu1 %v877_v58  ;;  %802 = vmatprep.mubr.f32.mxu1 %v424_v5 }
 0x166   : > { %882 = vmatprep.subr.bf16.mxu1 %v881_v2 }
 0x169   : > { %884 = vmatpush3.bf16.msra.mxu1 %v881_v2 }
 0x16a   : > { %886 = vmatprep.subr.bf16.mxu1 %v885_v8 }
 0x16d   : > { %888 = vmatpush3.bf16.msra.mxu1 %v885_v8 }
 0x16e   : > { %890 = vmatprep.subr.bf16.mxu1 %v889_v14 }
 0x171   : > { %892 = vmatpush3.bf16.msra.mxu1 %v889_v14 }
 0x172   : > { %894 = vmatprep.subr.bf16.mxu1 %v893_v18 }
 0x175   : > { %896 = vmatpush3.bf16.msra.mxu1 %v893_v18 }
 0x176   : > { %898 = vmatprep.subr.bf16.mxu1 %v897_v21 }
 0x179   : > { %900 = vmatpush3.bf16.msra.mxu1 %v897_v21 }
 0x17a   : > { %902 = vmatprep.subr.bf16.mxu1 %v901_v25 }
 0x17d   : > { %904 = vmatpush3.bf16.msra.mxu1 %v901_v25 }
 0x180   : > { %803 = vmatmul.mubr.msk.f32.vlgmr.msra.gmra.mrb[4].mxu1 %vm710_vm6, %v427_v26 }
 0x233   : > { %v746_v27 = vpop.f32.mrb[0].mxu1 }
 0x234   : > { %v747_v28 = vpop.f32.mrb[1].mxu1 }
 0x235   : > { %v748_v29 = vadd.f32 %v747_v28, %v746_v27 }
 0x237   : > { %v749_v30 = vpop.f32.mrb[2].mxu1  ;;  %v552_v36 = vadd.f32 %v748_v29, %v707_v3 }
 0x238   : > { %v750_v31 = vpop.f32.mrb[3].mxu1 }
 0x239   : > { %v751_v32 = vadd.f32 %v750_v31, %v749_v30 }
 0x23b   : > { %v557_v34 = vadd.f32 %v751_v32, %v707_v3 }
 0x253   : > { %v804_v35 = vpop.f32.mrb[4].mxu1 }
 0x254   : > { %v632_v33 = vadd.f32 %v804_v35, %v557_v34  ;;  %v626_v37 = vpop.f32.mrb[5].mxu1 }
 0x255   : > { %v627_v9 = vadd.f32 %v626_v37, %v552_v36 }
 0x256   : > { %v636_v10 = vmax.f32 %v632_v33, 0.0 }
 0x257   : > { %v635_v12 = vmax.f32 %v627_v9, 0.0 }
 0x258   : > { %638 = vst [vmem:[%s226_s12 + $0x8] sm:$0xff] %v636_v10 }
 0x259   : > { %637 = vst [vmem:[%s226_s12] sm:$0xff] %v635_v12 }
 0x25a PF: > { %s15_s18 = sadd.s32 1, %s921_s18  }
 0x25b   : > { %p12_p4 = scmp.ge.s32.totalorder %s15_s18, 4  }
 0x25d   :  { %14 = sbr.rel (!%p12_p4) target bundleno = 1 (0x1), region = 70 }

</bundles_post_ra>
